<compile_context>
chip_gen: v6e
topology: v6e:2x2x1
jax: 0.10.0
libtpu: 0.0.40
codegen_flags: <defaults>
</compile_context>

<pallas_src>
import jax
import jax.numpy as jnp
from jax.experimental import pallas as pl
from jax.experimental.pallas import tpu as pltpu


def _round_up(x, m):
    return (x + m - 1) // m * m


def mlp_kernel(x_ref, w1_ref, b1_ref, w2_ref, b2_ref, o_ref):
    # fc1: bf16 x bf16 on the MXU, f32 accumulation.
    h = jnp.dot(x_ref[...], w1_ref[...], preferred_element_type=jnp.float32)
    # Bias + ReLU epilogue in f32 (v5e has no bf16 VPU path).
    h = jnp.maximum(h + b1_ref[...], 0.0)
    # dropout(0.3): identity in eval/inference mode.
    # TODO(synk): training-mode dropout (pltpu.prng_seed + prng_random_bits mask
    #             with 1/(1-p) scaling) is not implemented; inference semantics only.
    # fc2: cast activations down to bf16 right before the second MXU pass.
    out = jnp.dot(h.astype(w2_ref.dtype), w2_ref[...],
                  preferred_element_type=jnp.float32)
    o_ref[...] = (out + b2_ref[...]).astype(o_ref.dtype)


def multilabel_mlp_forward(x, w1, b1, w2, b2, *, block_batch=512):
    """x: [B, D] f32, w1: [D, H], b1: [H], w2: [H, C], b2: [C] -> [B, C] f32."""
    B, D = x.shape
    H = w1.shape[1]
    C = w2.shape[1]

    # Lane-dense output: pad class dim up to a multiple of 128.
    C_pad = _round_up(C, 128)
    # Batch tiling: 8-aligned tile, batch padded to a whole number of tiles.
    TB = min(block_batch, _round_up(B, 8))
    B_pad = _round_up(B, TB)

    # bf16 operands for the MXU; biases stay f32 (added to the f32 accumulator).
    x_p = jnp.zeros((B_pad, D), jnp.bfloat16).at[:B].set(x.astype(jnp.bfloat16))
    w1_b = w1.astype(jnp.bfloat16)
    b1_f = b1.reshape(1, H).astype(jnp.float32)
    w2_p = jnp.zeros((H, C_pad), jnp.bfloat16).at[:, :C].set(w2.astype(jnp.bfloat16))
    b2_p = jnp.zeros((1, C_pad), jnp.float32).at[:, :C].set(b2.reshape(1, C).astype(jnp.float32))

    grid = (B_pad // TB,)

    # VMEM budget: double-buffered x/out tiles + fc1 activation + (conservatively
    # double-buffered) resident weights, with headroom; capped below v7x's 64 MiB.
    tile_bytes = 2 * TB * D * 2 + 2 * TB * C_pad * 4 + TB * H * 4
    weight_bytes = 2 * (w1_b.size * 2 + w2_p.size * 2 + b1_f.size * 4 + b2_p.size * 4)
    vmem_limit = min(int(1.5 * (tile_bytes + weight_bytes)) + (4 << 20), 60 << 20)

    cost = pl.CostEstimate(
        flops=2 * B_pad * (D * H + H * C_pad),
        transcendentals=0,
        bytes_accessed=(x_p.size * 2 + w1_b.size * 2 + w2_p.size * 2
                        + b1_f.size * 4 + b2_p.size * 4 + B_pad * C_pad * 4),
    )

    out_padded = pl.pallas_call(
        mlp_kernel,
        out_shape=jax.ShapeDtypeStruct((B_pad, C_pad), jnp.float32),
        grid=grid,
        in_specs=[
            pl.BlockSpec((TB, D), lambda i: (i, 0)),        # x tile (pipelined)
            pl.BlockSpec((D, H), lambda i: (0, 0)),         # w1 (VMEM-resident)
            pl.BlockSpec((1, H), lambda i: (0, 0)),         # b1 (VMEM-resident)
            pl.BlockSpec((H, C_pad), lambda i: (0, 0)),     # w2 (VMEM-resident)
            pl.BlockSpec((1, C_pad), lambda i: (0, 0)),     # b2 (VMEM-resident)
        ],
        out_specs=pl.BlockSpec((TB, C_pad), lambda i: (i, 0)),
        compiler_params=pltpu.CompilerParams(
            dimension_semantics=("parallel",),
            vmem_limit_bytes=vmem_limit,
        ),
        cost_estimate=cost,
    )(x_p, w1_b, b1_f, w2_p, b2_p)

    return out_padded[:B, :C]


def init_params(key, input_dim, hidden_dim, num_classes, dtype=jnp.float32):
    """Deterministic PyTorch-style (uniform +/- 1/sqrt(fan_in)) init."""
    k1, k2, k3, k4 = jax.random.split(key, 4)
    bound1 = 1.0 / jnp.sqrt(input_dim)
    bound2 = 1.0 / jnp.sqrt(hidden_dim)
    w1 = jax.random.uniform(k1, (input_dim, hidden_dim), dtype, -bound1, bound1)
    b1 = jax.random.uniform(k2, (hidden_dim,), dtype, -bound1, bound1)
    w2 = jax.random.uniform(k3, (hidden_dim, num_classes), dtype, -bound2, bound2)
    b2 = jax.random.uniform(k4, (num_classes,), dtype, -bound2, bound2)
    return w1, b1, w2, b2


if __name__ == "__main__":
    # Small shapes consistent with the module's forward: x is [batch, input_dim].
    batch, input_dim, hidden_dim, num_classes = 8, 64, 128, 3

    key = jax.random.PRNGKey(0)
    kx, kp = jax.random.split(key)
    x = jax.random.normal(kx, (batch, input_dim), jnp.float32)
    w1, b1, w2, b2 = init_params(kp, input_dim, hidden_dim, num_classes)

    out = multilabel_mlp_forward(x, w1, b1, w2, b2)
    out = jax.block_until_ready(out)

    # Reference in plain JAX, mimicking the kernel's bf16 casts with f32 accumulation.
    xb = x.astype(jnp.bfloat16).astype(jnp.float32)
    w1b = w1.astype(jnp.bfloat16).astype(jnp.float32)
    w2b = w2.astype(jnp.bfloat16).astype(jnp.float32)
    h_ref = jnp.maximum(xb @ w1b + b1[None, :], 0.0)
    h_ref = h_ref.astype(jnp.bfloat16).astype(jnp.float32)
    ref = h_ref @ w2b + b2[None, :]

    assert out.shape == (batch, num_classes)
    assert jnp.allclose(out, ref, atol=1e-2, rtol=1e-2), (
        float(jnp.max(jnp.abs(out - ref))))

    print("KERNEL_OK")
</pallas_src>

<mosaic_0001>
module attributes {stable_mosaic.version = 11 : i64} {
  func.func @mlp_kernel(%arg0: i32, %arg1: memref<8x64xbf16, #tpu.memory_space<vmem>>, %arg2: memref<64x128xbf16, #tpu.memory_space<vmem>>, %arg3: memref<1x128xf32, #tpu.memory_space<vmem>>, %arg4: memref<128x128xbf16, #tpu.memory_space<vmem>>, %arg5: memref<1x128xf32, #tpu.memory_space<vmem>>, %arg6: memref<8x128xf32, #tpu.memory_space<vmem>>) attributes {dimension_semantics = [#tpu.dimension_semantics<parallel>], iteration_bounds = array<i64: 1>, scalar_prefetch = 0 : i64, scratch_operands = 0 : i64, tpu.core_type = #tpu.core_type<tc>, window_params = [{transform_indices = @transform_0, window_bounds = array<i64: 8, 64>}, {pipeline_mode = #tpu.pipeline_mode<synchronous>, transform_indices = @transform_1, window_bounds = array<i64: 64, 128>}, {pipeline_mode = #tpu.pipeline_mode<synchronous>, transform_indices = @transform_2, window_bounds = array<i64: 1, 128>}, {pipeline_mode = #tpu.pipeline_mode<synchronous>, transform_indices = @transform_3, window_bounds = array<i64: 128, 128>}, {pipeline_mode = #tpu.pipeline_mode<synchronous>, transform_indices = @transform_4, window_bounds = array<i64: 1, 128>}, {transform_indices = @transform_5, window_bounds = array<i64: 8, 128>}]} {
    %c0 = arith.constant 0 : index
    %c0_0 = arith.constant 0 : index
    %0 = vector.load %arg1[%c0, %c0_0] : memref<8x64xbf16, #tpu.memory_space<vmem>>, vector<8x64xbf16>
    %c0_1 = arith.constant 0 : index
    %c0_2 = arith.constant 0 : index
    %1 = vector.load %arg2[%c0_1, %c0_2] : memref<64x128xbf16, #tpu.memory_space<vmem>>, vector<64x128xbf16>
    %cst = arith.constant dense<0.000000e+00> : vector<8x128xf32>
    %2 = tpu.matmul %0, %1, %cst {dimension_numbers = #tpu.dot_dimension_numbers<[1], [0], [0], [1], [0, 0, 1, 1], [], []>} : vector<8x64xbf16>, vector<64x128xbf16>, vector<8x128xf32> -> vector<8x128xf32>
    %c0_3 = arith.constant 0 : index
    %c0_4 = arith.constant 0 : index
    %3 = vector.load %arg3[%c0_3, %c0_4] : memref<1x128xf32, #tpu.memory_space<vmem>>, vector<1x128xf32>
    %4 = vector.broadcast %3 : vector<1x128xf32> to vector<8x128xf32>
    %5 = arith.addf %2, %4 : vector<8x128xf32>
    %cst_5 = arith.constant 0.000000e+00 : f32
    %6 = vector.broadcast %cst_5 : f32 to vector<8x128xf32>
    %7 = arith.maximumf %5, %6 : vector<8x128xf32>
    %8 = arith.truncf %7 : vector<8x128xf32> to vector<8x128xbf16>
    %c0_6 = arith.constant 0 : index
    %c0_7 = arith.constant 0 : index
    %9 = vector.load %arg4[%c0_6, %c0_7] : memref<128x128xbf16, #tpu.memory_space<vmem>>, vector<128x128xbf16>
    %cst_8 = arith.constant dense<0.000000e+00> : vector<8x128xf32>
    %10 = tpu.matmul %8, %9, %cst_8 {dimension_numbers = #tpu.dot_dimension_numbers<[1], [0], [0], [1], [0, 0, 1, 1], [], []>} : vector<8x128xbf16>, vector<128x128xbf16>, vector<8x128xf32> -> vector<8x128xf32>
    %c0_9 = arith.constant 0 : index
    %c0_10 = arith.constant 0 : index
    %11 = vector.load %arg5[%c0_9, %c0_10] : memref<1x128xf32, #tpu.memory_space<vmem>>, vector<1x128xf32>
    %12 = vector.broadcast %11 : vector<1x128xf32> to vector<8x128xf32>
    %13 = arith.addf %10, %12 : vector<8x128xf32>
    %c0_11 = arith.constant 0 : index
    %c0_12 = arith.constant 0 : index
    %14 = vector.load %arg6[%c0_11, %c0_12] : memref<8x128xf32, #tpu.memory_space<vmem>>, vector<8x128xf32>
    tpu.vector_store %arg6[%c0_11, %c0_12], %13 {strides = array<i32>} : memref<8x128xf32, #tpu.memory_space<vmem>>, vector<8x128xf32>,
    return
  }
  func.func @transform_0(%arg0: i32) -> (i32, i32) {
    %c0_i32 = arith.constant 0 : i32
    %c0_i32_0 = arith.constant 0 : i32
    return %arg0, %c0_i32 : i32, i32
  }
  func.func @transform_1(%arg0: i32) -> (i32, i32) {
    %c0_i32 = arith.constant 0 : i32
    %c0_i32_0 = arith.constant 0 : i32
    %c0_i32_1 = arith.constant 0 : i32
    return %c0_i32, %c0_i32_0 : i32, i32
  }
  func.func @transform_2(%arg0: i32) -> (i32, i32) {
    %c0_i32 = arith.constant 0 : i32
    %c0_i32_0 = arith.constant 0 : i32
    %c0_i32_1 = arith.constant 0 : i32
    return %c0_i32, %c0_i32_0 : i32, i32
  }
  func.func @transform_3(%arg0: i32) -> (i32, i32) {
    %c0_i32 = arith.constant 0 : i32
    %c0_i32_0 = arith.constant 0 : i32
    %c0_i32_1 = arith.constant 0 : i32
    return %c0_i32, %c0_i32_0 : i32, i32
  }
  func.func @transform_4(%arg0: i32) -> (i32, i32) {
    %c0_i32 = arith.constant 0 : i32
    %c0_i32_0 = arith.constant 0 : i32
    %c0_i32_1 = arith.constant 0 : i32
    return %c0_i32, %c0_i32_0 : i32, i32
  }
  func.func @transform_5(%arg0: i32) -> (i32, i32) {
    %c0_i32 = arith.constant 0 : i32
    %c0_i32_0 = arith.constant 0 : i32
    return %arg0, %c0_i32 : i32, i32
  }
}

</mosaic_0001>

<bundles_post_ra>
// kernel: tpu_custom_call.1
= control target key start
LH: loop header
LB: loop body
LE: loop exit
PB: predicated region body
PF: predicated region fallthrough
CT: control target
= control target key end

     0   :  { %10 = vsyncpa [#allocation3], 0  ;;  %s498_s0 = inlined_call_operand.hbm [shape: bf16[8,64], index: 0, kind: input, shape index: {}]   ;;  %s499_s1 = inlined_call_operand.hbm [shape: bf16[64,128], index: 1, kind: input, shape index: {}]   ;;  %s500_s2 = inlined_call_operand.vmem [shape: f32[1,128], index: 2, kind: input, shape index: {}]   ;;  %s501_s3 = inlined_call_operand.hbm [shape: bf16[128,128], index: 3, kind: input, shape index: {}]   ;;  %s502_s4 = inlined_call_operand.vmem [shape: f32[1,128], index: 4, kind: input, shape index: {}]   ;;  %s503_s5 = inlined_call_operand.hbm [shape: f32[8,128], index: 5, kind: output, shape index: {}]  }
   0x1   :  { %11 = vsyncpa [#allocation6], 0 }
   0x2   :  { %12 = vsyncpa [#allocation4], 0  ;;  %s442_s18 = smov [#allocation5]  }
   0x3   :  { %s28_s19 = sshll.u32 %s442_s18, 4  ;;  %s29_s19 = int_to_ptr.vmem [resolvable:$true] %s28_s19 }
   0x4   :  { %s364_s20 = scalar_lea.vmem %s29_s19, 512  ;;  %p369_p1 = scmp.lt.s32.totalorder %s29_s19, %s29_s19 }
   0x5   :  { %p365_p0 = scmp.ne.s32.totalorder %s29_s19, %s364_s20  ;;  %p370_p2 = scmp.lt.s32.totalorder %s364_s20, %s364_s20 }
   0x7   :  { %p371_p3 = por %p370_p2, %p369_p1 }
   0x9   :  { %p372_p4 = pnand %p371_p3, %p365_p0 }
   0xb   :  { %375 = shalt.err (!%p372_p4)
}
   0xc   :  { %s443_s21 = smov 64   ;;  %s444_s22 = smov 4  }
   0xd   :  { %34 = dma.hbm_to_vmem [thread:$0]  %s499_s1, 512, %s29_s19, [#allocation6], %s443_s21, %s443_s21, %s444_s22  }
   0xe   :  { %s445_s25 = smov [#allocation2]   ;;  %s446_s27 = smov [#allocation7]  }
   0xf   :  { %s19_s26 = sshll.u32 %s445_s25, 4  ;;  %s42_s28 = sshll.u32 %s446_s27, 4  ;;  %s20_s26 = int_to_ptr.vmem [resolvable:$true] %s19_s26  ;;  %s43_s28 = int_to_ptr.vmem [resolvable:$true] %s42_s28 }
  0x10   :  { %s384_s29 = scalar_lea.vmem %s20_s26, 64  ;;  %p389_p6 = scmp.lt.s32.totalorder %s20_s26, %s20_s26 }
  0x11   :  { %p385_p5 = scmp.ne.s32.totalorder %s20_s26, %s384_s29  ;;  %p390_p7 = scmp.lt.s32.totalorder %s384_s29, %s384_s29 }
  0x13   :  { %p391_p8 = por %p390_p7, %p389_p6 }
  0x15   :  { %p392_p9 = pnand %p391_p8, %p385_p5 }
  0x17   :  { %395 = shalt.err (!%p392_p9)
}
  0x18   :  { %22 = dma.hbm_to_vmem [thread:$0]  %s498_s0, 64, %s20_s26, [#allocation3]  }
  0x19   :  { %s404_s7 = scalar_lea.vmem %s43_s28, 1024  ;;  %p409_p11 = scmp.lt.s32.totalorder %s43_s28, %s43_s28 }
  0x1a   :  { %p405_p10 = scmp.ne.s32.totalorder %s43_s28, %s404_s7  ;;  %p410_p12 = scmp.lt.s32.totalorder %s404_s7, %s404_s7 }
  0x1c   :  { %p411_p13 = por %p410_p12, %p409_p11 }
  0x1e   :  { %p412_p0 = pnand %p411_p13, %p405_p10 }
  0x20   :  { %415 = shalt.err (!%p412_p0)
}
  0x21   :  { %48 = dma.hbm_to_vmem [thread:$0]  %s501_s3, 1024, %s43_s28, [#allocation6], %s443_s21, %s443_s21, %s444_s22  }
  0x22   :  { %436 = dma.done.wait [#allocation3], 64  }
  0x23   :  { %437 = vsyncadd [#allocation3], 4294967232 }
  0x24   :  { %438 = dma.done.wait [#allocation6], 1536  }
  0x25   :  { %439 = vsyncadd [#allocation6], 4294965760  ;;  %v447_v0 = vmov 0.0   ;;  %vm448_vm0 = vmmov 0   ;;  %v344_v1 = vld [vmem:[#allocation5 + $0x18] sm:$0xff]   ;;  %v345_v2 = vld [vmem:[#allocation5 + $0x10] sm:$0xff]  }
  0x26   :  { %304 = vmatprep.subr.bf16.mxu0 %v447_v0  ;;  %312 = vmatprep.mubr.msk.bf16.mxu0 %vm448_vm0, %v447_v0  ;;  %v348_v3 = vld [vmem:[#allocation7 + $0x38] sm:$0xff]   ;;  %v346_v4 = vld [vmem:[#allocation5 + $0x8] sm:$0xff]   ;;  %v349_v5 = vld [vmem:[#allocation7 + $0x30] sm:$0xff]   ;;  %vm101_vm1 = vcmask 523264   ;;  %s449_s11 = smov [#allocation8]  }
  0x27   :  { %316 = vmatprep.subr.bf16.mxu1 %v447_v0  ;;  %332 = vmatprep.mubr.msk.bf16.mxu1 %vm448_vm0, %v447_v0  ;;  %v347_v6 = vld [vmem:[#allocation5] sm:$0xff]   ;;  %v350_v7 = vld [vmem:[#allocation7 + $0x28] sm:$0xff]   ;;  %v61_v8 = vld [vmem:[#allocation2] sm:$0xf]  ;;  %s265_s12 = sshll.u32 %s449_s11, 4  ;;  %s266_s12 = int_to_ptr.vmem [resolvable:$true] %s265_s12 }
  0x28   :  { %305 = vmatpush3.bf16.msra.mxu0 %v344_v1  ;;  %317 = vmatpush3.bf16.msra.mxu1 %v348_v3  ;;  %v351_v9 = vld [vmem:[#allocation7 + $0x20] sm:$0xff]   ;;  %v352_v10 = vld [vmem:[#allocation7 + $0x18] sm:$0xff]   ;;  %v353_v11 = vld [vmem:[#allocation7 + $0x10] sm:$0xff]   ;;  %p421_p2 = scmp.lt.s32.totalorder %s266_s12, %s266_s12 }
  0x29   :  { %306 = vmatprep.subr.bf16.mxu0 %v447_v0  ;;  %318 = vmatprep.subr.bf16.mxu1 %v447_v0  ;;  %v354_v12 = vld [vmem:[#allocation7 + $0x8] sm:$0xff]   ;;  %v355_v13 = vld [vmem:[#allocation7] sm:$0xff]   ;;  %v275_v14 = vld [vmem:[%s500_s2] ss:$0 sm:$0xff]  ;;  %s416_s2 = scalar_lea.vmem %s266_s12, 128 }
  0x2a   :  { %v281_v22 = vld [vmem:[%s502_s4] ss:$0 sm:$0xff]  ;;  %p417_p1 = scmp.ne.s32.totalorder %s266_s12, %s416_s2  ;;  %p422_p3 = scmp.lt.s32.totalorder %s416_s2, %s416_s2 }
  0x2c   :  { %307 = vmatpush3.bf16.msra.mxu0 %v345_v2  ;;  %319 = vmatpush3.bf16.msra.mxu1 %v349_v5  ;;  %p423_p4 = por %p422_p3, %p421_p2 }
  0x2d   :  { %308 = vmatprep.subr.bf16.mxu0 %v447_v0  ;;  %320 = vmatprep.subr.bf16.mxu1 %v447_v0 }
  0x2e   :  { %p424_p5 = pnand %p423_p4, %p417_p1 }
  0x30   :  { %309 = vmatpush3.bf16.msra.mxu0 %v346_v4  ;;  %321 = vmatpush3.bf16.msra.mxu1 %v350_v7 }
  0x31   :  { %310 = vmatprep.subr.bf16.mxu0 %v447_v0  ;;  %322 = vmatprep.subr.bf16.mxu1 %v447_v0 }
  0x34   :  { %311 = vmatpush3.bf16.msra.mxu0 %v347_v6  ;;  %323 = vmatpush3.bf16.msra.mxu1 %v351_v9 }
  0x35   :  { %324 = vmatprep.subr.bf16.mxu1 %v447_v0 }
  0x37   :  { %313 = vmatmul.mubr.msk.bf16.vlgmr.msra.gmra.mxu0 %vm101_vm1, %v61_v8 }
  0x38   :  { %325 = vmatpush3.bf16.msra.mxu1 %v352_v10 }
  0x39   :  { %326 = vmatprep.subr.bf16.mxu1 %v447_v0 }
  0x3c   :  { %327 = vmatpush3.bf16.msra.mxu1 %v353_v11 }
  0x3d   :  { %328 = vmatprep.subr.bf16.mxu1 %v447_v0 }
  0x40   :  { %329 = vmatpush3.bf16.msra.mxu1 %v354_v12 }
  0x41   :  { %330 = vmatprep.subr.bf16.mxu1 %v447_v0 }
  0x44   :  { %331 = vmatpush3.bf16.msra.mxu1 %v355_v13 }
  0xf7   :  { %v139_v15 = vpop.f32.mrf.mxu0 }
  0xf8   :  { %v140_v16 = vadd.f32 %v275_v14, %v139_v15 }
  0xf9   :  { %v314_v17 = vpop.f32.mrf.mxu0 }
  0xfa   :  { %v145_v18 = vmax.f32 %v140_v16, 0.0 }
  0xfb   :  { %v142_v19 = vpop.f32.mrf.mxu0 }
  0xfc   :  { %v146_v20 = vpack.c.bf16 %v145_v18, %v145_v18 }
  0xfd   :  { %v315_v21 = vpop.f32.mrf.mxu0 }
  0xfe   :  { %333 = vmatmul.mubr.bf16.vlgmr.msra.gmra.mxu1 %v146_v20 }
 0x1be   :  { %v252_v23 = vpop.f32.mrf.mxu1 }
 0x1bf   :  { %v253_v24 = vadd.f32 %v281_v22, %v252_v23 }
 0x1c0   :  { %v334_v25 = vpop.f32.mrf.mxu1 }
 0x1c1   :  { %258 = vst [vmem:[#allocation8] sm:$0xff] %v253_v24 }
 0x1c2   :  { %v255_v26 = vpop.f32.mrf.mxu1 }
 0x1c3   :  { %427 = shalt.err (!%p424_p5)
}
 0x1c4   :  { %268 = dma.vmem_to_hbm [thread:$0]  %s266_s12, 128, %s503_s5, [#allocation4]   ;;  %v335_v27 = vpop.f32.mrf.mxu1 }
 0x1c5   :  { %440 = dma.done.wait [#allocation4], 128  }
 0x1c6   :  { %441 = vsyncadd [#allocation4], 4294967168 }
 0x1c7   :  { %272 = vsyncpa [#allocation3], 1 }
 0x1c8   :  { %273 = vsyncpa [#allocation6], 1 }
 0x1c9   :  { %274 = vsyncpa [#allocation4], 1 }

</bundles_post_ra>
